<compile_context>
chip_gen: v7x
topology: tpu7x:2x2x1
jax: 0.10.0
libtpu: 0.0.40
codegen_flags: <defaults>
</compile_context>

<pallas_src>
import functools

import jax
import jax.numpy as jnp
from jax.experimental import pallas as pl
from jax.experimental.pallas import tpu as pltpu

_INV_SQRT2 = 0.7071067811865476  # 1/sqrt(2), Python literal (no captured const)


def _lm_head_kernel(feat_ref, w1_ref, b1_ref, gamma_ref, beta_ref,
                    w2_ref, b2_ref, out_ref, h_ref, *, eps):
    # feat_ref : (tm, H)   tile of flattened features
    # w1_ref   : (H, H)    dense weight  (in, out), resident across the grid
    # b1_ref   : (1, H)    dense bias
    # gamma_ref: (1, H)    layer-norm scale
    # beta_ref : (1, H)    layer-norm shift
    # w2_ref   : (H, tn)   decoder weight column tile (streamed over vocab)
    # b2_ref   : (1, tn)   decoder bias tile
    # out_ref  : (tm, tn)  output logits tile
    # h_ref    : (tm, H)   scratch in decoder dtype holding the LayerNorm'd hidden

    # Hidden stage (dense -> GELU -> LayerNorm): compute once per row tile on
    # the first vocab tile; store once in the decoder dtype and reuse.
    @pl.when(pl.program_id(1) == 0)
    def _():
        h = jnp.dot(feat_ref[...].astype(w1_ref.dtype), w1_ref[...],
                    preferred_element_type=jnp.float32)
        h = h + b1_ref[...].astype(jnp.float32)

        # exact GELU (erf form), matching torch.nn.functional.gelu default
        h = 0.5 * h * (1.0 + jax.lax.erf(h * _INV_SQRT2))

        # layer norm over the hidden dim (f32 math)
        mean = jnp.mean(h, axis=-1, keepdims=True)
        centered = h - mean
        var = jnp.mean(centered * centered, axis=-1, keepdims=True)
        inv = jax.lax.rsqrt(var + eps)
        h = (centered * inv * gamma_ref[...].astype(jnp.float32)
             + beta_ref[...].astype(jnp.float32))
        h_ref[...] = h.astype(h_ref.dtype)   # single downcast per row tile

    # Decoder: h @ W2_tile + b2_tile  (MXU, f32 accumulate) -- no per-tile casts
    logits = jnp.dot(h_ref[...], w2_ref[...],
                     preferred_element_type=jnp.float32)
    logits = logits + b2_ref[...].astype(jnp.float32)
    out_ref[...] = logits.astype(out_ref.dtype)


def _tpu_vmem_capacity_bytes(default=64 * 1024 * 1024):
    """Physical VMEM capacity; conservative fallback if the query fails."""
    try:
        return int(pltpu.get_tpu_info().vmem_capacity_bytes)
    except Exception:
        return int(default)


def roberta_lm_head2(features, params, *, eps=1e-5, tm=None, tn=None):
    """features: [B, S, H].  Returns logits [B, S, V].

    tm / tn default to chip-dependent values derived from the real VMEM
    capacity (big tm keeps the W2 stream amortized; see module docstring).
    """
    B, S, H = features.shape
    w1, b1, gamma, beta, w2, b2 = (
        params["dense_w"], params["dense_b"],
        params["ln_gamma"], params["ln_beta"],
        params["decoder_w"], params["decoder_b"],
    )
    V = w2.shape[1]
    M = B * S
    feat2d = features.reshape(M, H)

    out_dtype = features.dtype
    f_item = jnp.dtype(features.dtype).itemsize
    w1_item = jnp.dtype(w1.dtype).itemsize
    w2_item = jnp.dtype(w2.dtype).itemsize
    h_item = jnp.dtype(w2.dtype).itemsize
    o_item = jnp.dtype(out_dtype).itemsize

    vmem_cap = _tpu_vmem_capacity_bytes()
    big_vmem = vmem_cap >= (96 << 20)        # v5e/v6e: 128 MiB, v7x: 64 MiB

    # Large row tiles are the biggest lever: W2 HBM traffic is (M/tm)*H*V.
    if tm is None:
        tm = 1024 if big_vmem else 512
    if tn is None:
        tn = 4096 if big_vmem else 2048

    # Legalize tiles: full dim, or a multiple of (8, 128).
    tm = M if M <= tm else max(8, (tm // 8) * 8)
    tn = V if V <= tn else max(128, (tn // 128) * 128)

    w2_bufs_max = 3   # extra W2 prefetch depth hides the j==0 hidden stage

    def est_vmem(tm_, tn_):
        return (2 * tm_ * H * f_item                 # feature tiles (double buf)
                + 1 * H * H * w1_item                # dense weight (single buf)
                + w2_bufs_max * H * tn_ * w2_item    # decoder weight tiles
                + 2 * tm_ * tn_ * o_item             # output tiles
                + tm_ * H * h_item                   # hidden scratch (decoder dtype)
                + 2 * tn_ * w2_item + 6 * H * w1_item)   # biases / LN params

    # Shrink tiles if they would overflow the real capacity (minus headroom).
    budget = vmem_cap - (12 << 20)
    while est_vmem(tm, tn) > budget and tn > 512 and tn < V:
        tn = max(512, ((tn // 2) // 128) * 128)
    while est_vmem(tm, tn) > budget and tm > 256 and tm < M:
        tm = max(256, ((tm // 2) // 8) * 8)

    grid_m = pl.cdiv(M, tm)
    grid_v = pl.cdiv(V, tn)
    grid = (grid_m, grid_v)
    w2_bufs = 3 if grid_v >= 3 else 2

    est = est_vmem(tm, tn)
    # Never request more than the physical VMEM (v7x is only 64 MiB).
    vmem_limit = int(min(vmem_cap - (4 << 20), max(32 << 20, est * 3 // 2)))
    vmem_limit = max(vmem_limit, 16 << 20)

    cost = pl.CostEstimate(
        flops=2 * M * H * H + 2 * M * H * V,
        transcendentals=M * H,                       # erf in GELU
        bytes_accessed=(M * H * f_item               # features in
                        + H * H * w1_item            # W1 (resident, read once)
                        + grid_m * H * V * w2_item   # W2 re-streamed per row tile
                        + 3 * H * w1_item + V * w2_item  # biases + LN params
                        + M * V * o_item),           # logits out
    )

    kernel = functools.partial(_lm_head_kernel, eps=float(eps))

    def make_call(use_pipeline_mode):
        if use_pipeline_mode:
            inv_kw = {"pipeline_mode": pl.Buffered(1)}   # grid-invariant inputs
            w2_kw = {"pipeline_mode": pl.Buffered(w2_bufs)}
        else:
            inv_kw = {}
            w2_kw = {}
        in_specs = [
            pl.BlockSpec((tm, H), lambda i, j: (i, 0)),             # features tile
            pl.BlockSpec((H, H), lambda i, j: (0, 0), **inv_kw),    # dense weight
            pl.BlockSpec((1, H), lambda i, j: (0, 0), **inv_kw),    # dense bias
            pl.BlockSpec((1, H), lambda i, j: (0, 0), **inv_kw),    # ln gamma
            pl.BlockSpec((1, H), lambda i, j: (0, 0), **inv_kw),    # ln beta
            pl.BlockSpec((H, tn), lambda i, j: (0, j), **w2_kw),    # decoder weight
            pl.BlockSpec((1, tn), lambda i, j: (0, j)),             # decoder bias
        ]
        return pl.pallas_call(
            kernel,
            out_shape=jax.ShapeDtypeStruct((M, V), out_dtype),
            grid_spec=pltpu.PrefetchScalarGridSpec(
                num_scalar_prefetch=0,
                grid=grid,
                in_specs=in_specs,
                out_specs=pl.BlockSpec((tm, tn), lambda i, j: (i, j)),
                # hidden-state scratch lives in the decoder dtype (bf16 when
                # bf16 weights are used) -> no per-vocab-tile casts, half VMEM.
                scratch_shapes=[pltpu.VMEM((tm, H), w2.dtype)],
            ),
            compiler_params=pltpu.CompilerParams(
                dimension_semantics=("parallel", "arbitrary"),
                vmem_limit_bytes=vmem_limit),
            cost_estimate=cost,
        )

    call_args = (feat2d, w1, b1.reshape(1, H), gamma.reshape(1, H),
                 beta.reshape(1, H), w2, b2.reshape(1, V))
    try:
        out2d = make_call(True)(*call_args)
    except Exception:
        # Fallback for Pallas versions without BlockSpec pipeline_mode.
        out2d = make_call(False)(*call_args)

    return out2d.reshape(B, S, V)


def init_params(key, hidden_size, out_vocab_size, dtype=jnp.float32):
    """Deterministic synthetic parameters (shapes from RobertaLMHead2.__init__).

    For production-size runs prefer dtype=jnp.bfloat16: bf16 weights halve W2
    HBM traffic and use the MXU's fast path (f32 accumulation is kept).
    """
    k1, k2, k3 = jax.random.split(key, 3)
    scale1 = 1.0 / jnp.sqrt(hidden_size)
    return {
        # stored as [in, out] (transposed vs PyTorch nn.Linear.weight)
        "dense_w": (jax.random.normal(k1, (hidden_size, hidden_size), jnp.float32)
                    * scale1).astype(dtype),
        "dense_b": (jax.random.normal(k2, (hidden_size,), jnp.float32) * 0.02
                    ).astype(dtype),
        "ln_gamma": jnp.ones((hidden_size,), dtype),
        "ln_beta": jnp.zeros((hidden_size,), dtype),
        "decoder_w": (jax.random.normal(k3, (hidden_size, out_vocab_size), jnp.float32)
                      * scale1).astype(dtype),
        "decoder_b": jnp.zeros((out_vocab_size,), dtype),  # self.bias init = zeros
    }


def _reference(features, params, eps=1e-5):
    """Pure-JAX reference for correctness checking (f32 math)."""
    x = features.astype(jnp.float32) @ params["dense_w"].astype(jnp.float32)
    x = x + params["dense_b"].astype(jnp.float32)
    x = jax.nn.gelu(x, approximate=False)
    mean = x.mean(-1, keepdims=True)
    var = ((x - mean) ** 2).mean(-1, keepdims=True)
    x = ((x - mean) / jnp.sqrt(var + eps) * params["ln_gamma"].astype(jnp.float32)
         + params["ln_beta"].astype(jnp.float32))
    return x @ params["decoder_w"].astype(jnp.float32) + params["decoder_b"].astype(jnp.float32)


if __name__ == "__main__":
    B, S, H, V = 2, 8, 32, 64   # small config: batch=2, seq=8, hidden=32, vocab=64
    key = jax.random.PRNGKey(0)
    kf, kp = jax.random.split(key)
    features = jax.random.normal(kf, (B, S, H), jnp.float32)
    params = init_params(kp, H, V)

    out = roberta_lm_head2(features, params, eps=1e-5)
    out = jax.block_until_ready(out)

    ref = _reference(features, params, eps=1e-5)
    assert out.shape == (B, S, V)
    assert jnp.allclose(out, ref, atol=1e-4, rtol=1e-4), float(jnp.max(jnp.abs(out - ref)))
    print("KERNEL_OK")
</pallas_src>

<mosaic_0001>
module attributes {stable_mosaic.version = 11 : i64} {
  func.func @_lm_head_kernel(%arg0: i32, %arg1: i32, %arg2: memref<16x32xf32, #tpu.memory_space<vmem>>, %arg3: memref<32x32xf32, #tpu.memory_space<vmem>>, %arg4: memref<1x32xf32, #tpu.memory_space<vmem>>, %arg5: memref<1x32xf32, #tpu.memory_space<vmem>>, %arg6: memref<1x32xf32, #tpu.memory_space<vmem>>, %arg7: memref<32x64xf32, #tpu.memory_space<vmem>>, %arg8: memref<1x64xf32, #tpu.memory_space<vmem>>, %arg9: memref<16x64xf32, #tpu.memory_space<vmem>>, %arg10: memref<16x32xf32, #tpu.memory_space<vmem>>) attributes {dimension_semantics = [#tpu.dimension_semantics<parallel>, #tpu.dimension_semantics<arbitrary>], iteration_bounds = array<i64: 1, 1>, scalar_prefetch = 0 : i64, scratch_operands = 1 : i64, tpu.core_type = #tpu.core_type<tc>, window_params = [{transform_indices = @transform_0, window_bounds = array<i64: 16, 32>}, {pipeline_mode = #tpu.pipeline_mode<synchronous>, transform_indices = @transform_1, window_bounds = array<i64: 32, 32>}, {pipeline_mode = #tpu.pipeline_mode<synchronous>, transform_indices = @transform_2, window_bounds = array<i64: 1, 32>}, {pipeline_mode = #tpu.pipeline_mode<synchronous>, transform_indices = @transform_3, window_bounds = array<i64: 1, 32>}, {pipeline_mode = #tpu.pipeline_mode<synchronous>, transform_indices = @transform_4, window_bounds = array<i64: 1, 32>}, {pipeline_mode = #tpu.pipeline_mode<double_buffered>, transform_indices = @transform_5, window_bounds = array<i64: 32, 64>}, {transform_indices = @transform_6, window_bounds = array<i64: 1, 64>}, {transform_indices = @transform_7, window_bounds = array<i64: 16, 64>}]} {
    %c0_i32 = arith.constant 0 : i32
    %0 = arith.cmpi eq, %arg1, %c0_i32 : i32
    %1 = arith.extui %0 : i1 to i32
    %c0_i32_0 = arith.constant 0 : i32
    %2 = arith.cmpi ne, %1, %c0_i32_0 : i32
    scf.if %2 {
      %c0_8 = arith.constant 0 : index
      %c0_9 = arith.constant 0 : index
      %10 = vector.load %arg2[%c0_8, %c0_9] : memref<16x32xf32, #tpu.memory_space<vmem>>, vector<16x32xf32>
      %c0_10 = arith.constant 0 : index
      %c0_11 = arith.constant 0 : index
      %11 = vector.load %arg3[%c0_10, %c0_11] : memref<32x32xf32, #tpu.memory_space<vmem>>, vector<32x32xf32>
      %cst_12 = arith.constant dense<0.000000e+00> : vector<16x32xf32>
      %12 = tpu.matmul %10, %11, %cst_12 {dimension_numbers = #tpu.dot_dimension_numbers<[1], [0], [0], [1], [0, 0, 1, 1], [], []>} : vector<16x32xf32>, vector<32x32xf32>, vector<16x32xf32> -> vector<16x32xf32>
      %c0_13 = arith.constant 0 : index
      %c0_14 = arith.constant 0 : index
      %13 = vector.load %arg4[%c0_13, %c0_14] : memref<1x32xf32, #tpu.memory_space<vmem>>, vector<1x32xf32>
      %14 = vector.broadcast %13 : vector<1x32xf32> to vector<16x32xf32>
      %15 = arith.addf %12, %14 : vector<16x32xf32>
      %cst_15 = arith.constant 5.000000e-01 : f32
      %16 = vector.broadcast %cst_15 : f32 to vector<16x32xf32>
      %17 = arith.mulf %16, %15 : vector<16x32xf32>
      %cst_16 = arith.constant 0.707106769 : f32
      %18 = vector.broadcast %cst_16 : f32 to vector<16x32xf32>
      %19 = arith.mulf %15, %18 : vector<16x32xf32>
      %20 = math.erf %19 : vector<16x32xf32>
      %cst_17 = arith.constant 1.000000e+00 : f32
      %21 = vector.broadcast %cst_17 : f32 to vector<16x32xf32>
      %22 = arith.addf %21, %20 : vector<16x32xf32>
      %23 = arith.mulf %17, %22 : vector<16x32xf32>
      %cst_18 = arith.constant dense<0.000000e+00> : vector<16xf32>
      %24 = vector.multi_reduction <add>, %23, %cst_18 [1] : vector<16x32xf32> to vector<16xf32>
      %25 = vector.shape_cast %24 : vector<16xf32> to vector<16x1xf32>
      %cst_19 = arith.constant 3.200000e+01 : f32
      %26 = vector.broadcast %cst_19 : f32 to vector<16x1xf32>
      %27 = arith.divf %25, %26 : vector<16x1xf32>
      %28 = vector.broadcast %27 : vector<16x1xf32> to vector<16x32xf32>
      %29 = arith.subf %23, %28 : vector<16x32xf32>
      %30 = arith.mulf %29, %29 : vector<16x32xf32>
      %cst_20 = arith.constant dense<0.000000e+00> : vector<16xf32>
      %31 = vector.multi_reduction <add>, %30, %cst_20 [1] : vector<16x32xf32> to vector<16xf32>
      %32 = vector.shape_cast %31 : vector<16xf32> to vector<16x1xf32>
      %cst_21 = arith.constant 3.200000e+01 : f32
      %33 = vector.broadcast %cst_21 : f32 to vector<16x1xf32>
      %34 = arith.divf %32, %33 : vector<16x1xf32>
      %cst_22 = arith.constant 9.99999974E-6 : f32
      %35 = vector.broadcast %cst_22 : f32 to vector<16x1xf32>
      %36 = arith.addf %34, %35 : vector<16x1xf32>
      %37 = math.rsqrt %36 : vector<16x1xf32>
      %38 = vector.broadcast %37 : vector<16x1xf32> to vector<16x32xf32>
      %39 = arith.mulf %29, %38 : vector<16x32xf32>
      %c0_23 = arith.constant 0 : index
      %c0_24 = arith.constant 0 : index
      %40 = vector.load %arg5[%c0_23, %c0_24] : memref<1x32xf32, #tpu.memory_space<vmem>>, vector<1x32xf32>
      %41 = vector.broadcast %40 : vector<1x32xf32> to vector<16x32xf32>
      %42 = arith.mulf %39, %41 : vector<16x32xf32>
      %c0_25 = arith.constant 0 : index
      %c0_26 = arith.constant 0 : index
      %43 = vector.load %arg6[%c0_25, %c0_26] : memref<1x32xf32, #tpu.memory_space<vmem>>, vector<1x32xf32>
      %44 = vector.broadcast %43 : vector<1x32xf32> to vector<16x32xf32>
      %45 = arith.addf %42, %44 : vector<16x32xf32>
      %c0_27 = arith.constant 0 : index
      %c0_28 = arith.constant 0 : index
      %46 = vector.load %arg10[%c0_27, %c0_28] : memref<16x32xf32, #tpu.memory_space<vmem>>, vector<16x32xf32>
      tpu.vector_store %arg10[%c0_27, %c0_28], %45 {strides = array<i32>} : memref<16x32xf32, #tpu.memory_space<vmem>>, vector<16x32xf32>,
    } else {
    }
    %c0 = arith.constant 0 : index
    %c0_1 = arith.constant 0 : index
    %3 = vector.load %arg10[%c0, %c0_1] : memref<16x32xf32, #tpu.memory_space<vmem>>, vector<16x32xf32>
    %c0_2 = arith.constant 0 : index
    %c0_3 = arith.constant 0 : index
    %4 = vector.load %arg7[%c0_2, %c0_3] : memref<32x64xf32, #tpu.memory_space<vmem>>, vector<32x64xf32>
    %cst = arith.constant dense<0.000000e+00> : vector<16x64xf32>
    %5 = tpu.matmul %3, %4, %cst {dimension_numbers = #tpu.dot_dimension_numbers<[1], [0], [0], [1], [0, 0, 1, 1], [], []>} : vector<16x32xf32>, vector<32x64xf32>, vector<16x64xf32> -> vector<16x64xf32>
    %c0_4 = arith.constant 0 : index
    %c0_5 = arith.constant 0 : index
    %6 = vector.load %arg8[%c0_4, %c0_5] : memref<1x64xf32, #tpu.memory_space<vmem>>, vector<1x64xf32>
    %7 = vector.broadcast %6 : vector<1x64xf32> to vector<16x64xf32>
    %8 = arith.addf %5, %7 : vector<16x64xf32>
    %c0_6 = arith.constant 0 : index
    %c0_7 = arith.constant 0 : index
    %9 = vector.load %arg9[%c0_6, %c0_7] : memref<16x64xf32, #tpu.memory_space<vmem>>, vector<16x64xf32>
    tpu.vector_store %arg9[%c0_6, %c0_7], %8 {strides = array<i32>} : memref<16x64xf32, #tpu.memory_space<vmem>>, vector<16x64xf32>,
    return
  }
  func.func @transform_0(%arg0: i32, %arg1: i32) -> (i32, i32) {
    %c0_i32 = arith.constant 0 : i32
    %c0_i32_0 = arith.constant 0 : i32
    return %arg0, %c0_i32 : i32, i32
  }
  func.func @transform_1(%arg0: i32, %arg1: i32) -> (i32, i32) {
    %c0_i32 = arith.constant 0 : i32
    %c0_i32_0 = arith.constant 0 : i32
    %c0_i32_1 = arith.constant 0 : i32
    return %c0_i32, %c0_i32_0 : i32, i32
  }
  func.func @transform_2(%arg0: i32, %arg1: i32) -> (i32, i32) {
    %c0_i32 = arith.constant 0 : i32
    %c0_i32_0 = arith.constant 0 : i32
    %c0_i32_1 = arith.constant 0 : i32
    return %c0_i32, %c0_i32_0 : i32, i32
  }
  func.func @transform_3(%arg0: i32, %arg1: i32) -> (i32, i32) {
    %c0_i32 = arith.constant 0 : i32
    %c0_i32_0 = arith.constant 0 : i32
    %c0_i32_1 = arith.constant 0 : i32
    return %c0_i32, %c0_i32_0 : i32, i32
  }
  func.func @transform_4(%arg0: i32, %arg1: i32) -> (i32, i32) {
    %c0_i32 = arith.constant 0 : i32
    %c0_i32_0 = arith.constant 0 : i32
    %c0_i32_1 = arith.constant 0 : i32
    return %c0_i32, %c0_i32_0 : i32, i32
  }
  func.func @transform_5(%arg0: i32, %arg1: i32) -> (i32, i32) {
    %c0_i32 = arith.constant 0 : i32
    %c0_i32_0 = arith.constant 0 : i32
    return %c0_i32, %arg1 : i32, i32
  }
  func.func @transform_6(%arg0: i32, %arg1: i32) -> (i32, i32) {
    %c0_i32 = arith.constant 0 : i32
    %c0_i32_0 = arith.constant 0 : i32
    return %c0_i32, %arg1 : i32, i32
  }
  func.func @transform_7(%arg0: i32, %arg1: i32) -> (i32, i32) {
    %c0_i32 = arith.constant 0 : i32
    return %arg0, %arg1 : i32, i32
  }
}

module attributes {stable_mosaic.version = 11 : i64} {
  func.func @_lm_head_kernel(%arg0: i32, %arg1: i32, %arg2: memref<16x32xf32, #tpu.memory_space<vmem>>, %arg3: memref<32x32xf32, #tpu.memory_space<vmem>>, %arg4: memref<1x32xf32, #tpu.memory_space<vmem>>, %arg5: memref<1x32xf32, #tpu.memory_space<vmem>>, %arg6: memref<1x32xf32, #tpu.memory_space<vmem>>, %arg7: memref<32x64xf32, #tpu.memory_space<vmem>>, %arg8: memref<1x64xf32, #tpu.memory_space<vmem>>, %arg9: memref<16x64xf32, #tpu.memory_space<vmem>>, %arg10: memref<16x32xf32, #tpu.memory_space<vmem>>) attributes {dimension_semantics = [#tpu.dimension_semantics<parallel>, #tpu.dimension_semantics<arbitrary>], iteration_bounds = array<i64: 1, 1>, scalar_prefetch = 0 : i64, scratch_operands = 1 : i64, tpu.core_type = #tpu.core_type<tc>, window_params = [{transform_indices = @transform_0, window_bounds = array<i64: 16, 32>}, {pipeline_mode = #tpu.pipeline_mode<synchronous>, transform_indices = @transform_1, window_bounds = array<i64: 32, 32>}, {pipeline_mode = #tpu.pipeline_mode<synchronous>, transform_indices = @transform_2, window_bounds = array<i64: 1, 32>}, {pipeline_mode = #tpu.pipeline_mode<synchronous>, transform_indices = @transform_3, window_bounds = array<i64: 1, 32>}, {pipeline_mode = #tpu.pipeline_mode<synchronous>, transform_indices = @transform_4, window_bounds = array<i64: 1, 32>}, {transform_indices = @transform_5, window_bounds = array<i64: 32, 64>}, {transform_indices = @transform_6, window_bounds = array<i64: 1, 64>}, {transform_indices = @transform_7, window_bounds = array<i64: 16, 64>}]} {
    %c0_i32 = arith.constant 0 : i32
    %0 = arith.cmpi eq, %arg1, %c0_i32 : i32
    %1 = arith.extui %0 : i1 to i32
    %c0_i32_0 = arith.constant 0 : i32
    %2 = arith.cmpi ne, %1, %c0_i32_0 : i32
    scf.if %2 {
      %c0_8 = arith.constant 0 : index
      %c0_9 = arith.constant 0 : index
      %10 = vector.load %arg2[%c0_8, %c0_9] : memref<16x32xf32, #tpu.memory_space<vmem>>, vector<16x32xf32>
      %c0_10 = arith.constant 0 : index
      %c0_11 = arith.constant 0 : index
      %11 = vector.load %arg3[%c0_10, %c0_11] : memref<32x32xf32, #tpu.memory_space<vmem>>, vector<32x32xf32>
      %cst_12 = arith.constant dense<0.000000e+00> : vector<16x32xf32>
      %12 = tpu.matmul %10, %11, %cst_12 {dimension_numbers = #tpu.dot_dimension_numbers<[1], [0], [0], [1], [0, 0, 1, 1], [], []>} : vector<16x32xf32>, vector<32x32xf32>, vector<16x32xf32> -> vector<16x32xf32>
      %c0_13 = arith.constant 0 : index
      %c0_14 = arith.constant 0 : index
      %13 = vector.load %arg4[%c0_13, %c0_14] : memref<1x32xf32, #tpu.memory_space<vmem>>, vector<1x32xf32>
      %14 = vector.broadcast %13 : vector<1x32xf32> to vector<16x32xf32>
      %15 = arith.addf %12, %14 : vector<16x32xf32>
      %cst_15 = arith.constant 5.000000e-01 : f32
      %16 = vector.broadcast %cst_15 : f32 to vector<16x32xf32>
      %17 = arith.mulf %16, %15 : vector<16x32xf32>
      %cst_16 = arith.constant 0.707106769 : f32
      %18 = vector.broadcast %cst_16 : f32 to vector<16x32xf32>
      %19 = arith.mulf %15, %18 : vector<16x32xf32>
      %20 = math.erf %19 : vector<16x32xf32>
      %cst_17 = arith.constant 1.000000e+00 : f32
      %21 = vector.broadcast %cst_17 : f32 to vector<16x32xf32>
      %22 = arith.addf %21, %20 : vector<16x32xf32>
      %23 = arith.mulf %17, %22 : vector<16x32xf32>
      %cst_18 = arith.constant dense<0.000000e+00> : vector<16xf32>
      %24 = vector.multi_reduction <add>, %23, %cst_18 [1] : vector<16x32xf32> to vector<16xf32>
      %25 = vector.shape_cast %24 : vector<16xf32> to vector<16x1xf32>
      %cst_19 = arith.constant 3.200000e+01 : f32
      %26 = vector.broadcast %cst_19 : f32 to vector<16x1xf32>
      %27 = arith.divf %25, %26 : vector<16x1xf32>
      %28 = vector.broadcast %27 : vector<16x1xf32> to vector<16x32xf32>
      %29 = arith.subf %23, %28 : vector<16x32xf32>
      %30 = arith.mulf %29, %29 : vector<16x32xf32>
      %cst_20 = arith.constant dense<0.000000e+00> : vector<16xf32>
      %31 = vector.multi_reduction <add>, %30, %cst_20 [1] : vector<16x32xf32> to vector<16xf32>
      %32 = vector.shape_cast %31 : vector<16xf32> to vector<16x1xf32>
      %cst_21 = arith.constant 3.200000e+01 : f32
      %33 = vector.broadcast %cst_21 : f32 to vector<16x1xf32>
      %34 = arith.divf %32, %33 : vector<16x1xf32>
      %cst_22 = arith.constant 9.99999974E-6 : f32
      %35 = vector.broadcast %cst_22 : f32 to vector<16x1xf32>
      %36 = arith.addf %34, %35 : vector<16x1xf32>
      %37 = math.rsqrt %36 : vector<16x1xf32>
      %38 = vector.broadcast %37 : vector<16x1xf32> to vector<16x32xf32>
      %39 = arith.mulf %29, %38 : vector<16x32xf32>
      %c0_23 = arith.constant 0 : index
      %c0_24 = arith.constant 0 : index
      %40 = vector.load %arg5[%c0_23, %c0_24] : memref<1x32xf32, #tpu.memory_space<vmem>>, vector<1x32xf32>
      %41 = vector.broadcast %40 : vector<1x32xf32> to vector<16x32xf32>
      %42 = arith.mulf %39, %41 : vector<16x32xf32>
      %c0_25 = arith.constant 0 : index
      %c0_26 = arith.constant 0 : index
      %43 = vector.load %arg6[%c0_25, %c0_26] : memref<1x32xf32, #tpu.memory_space<vmem>>, vector<1x32xf32>
      %44 = vector.broadcast %43 : vector<1x32xf32> to vector<16x32xf32>
      %45 = arith.addf %42, %44 : vector<16x32xf32>
      %c0_27 = arith.constant 0 : index
      %c0_28 = arith.constant 0 : index
      %46 = vector.load %arg10[%c0_27, %c0_28] : memref<16x32xf32, #tpu.memory_space<vmem>>, vector<16x32xf32>
      tpu.vector_store %arg10[%c0_27, %c0_28], %45 {strides = array<i32>} : memref<16x32xf32, #tpu.memory_space<vmem>>, vector<16x32xf32>,
    } else {
    }
    %c0 = arith.constant 0 : index
    %c0_1 = arith.constant 0 : index
    %3 = vector.load %arg10[%c0, %c0_1] : memref<16x32xf32, #tpu.memory_space<vmem>>, vector<16x32xf32>
    %c0_2 = arith.constant 0 : index
    %c0_3 = arith.constant 0 : index
    %4 = vector.load %arg7[%c0_2, %c0_3] : memref<32x64xf32, #tpu.memory_space<vmem>>, vector<32x64xf32>
    %cst = arith.constant dense<0.000000e+00> : vector<16x64xf32>
    %5 = tpu.matmul %3, %4, %cst {dimension_numbers = #tpu.dot_dimension_numbers<[1], [0], [0], [1], [0, 0, 1, 1], [], []>} : vector<16x32xf32>, vector<32x64xf32>, vector<16x64xf32> -> vector<16x64xf32>
    %c0_4 = arith.constant 0 : index
    %c0_5 = arith.constant 0 : index
    %6 = vector.load %arg8[%c0_4, %c0_5] : memref<1x64xf32, #tpu.memory_space<vmem>>, vector<1x64xf32>
    %7 = vector.broadcast %6 : vector<1x64xf32> to vector<16x64xf32>
    %8 = arith.addf %5, %7 : vector<16x64xf32>
    %c0_6 = arith.constant 0 : index
    %c0_7 = arith.constant 0 : index
    %9 = vector.load %arg9[%c0_6, %c0_7] : memref<16x64xf32, #tpu.memory_space<vmem>>, vector<16x64xf32>
    tpu.vector_store %arg9[%c0_6, %c0_7], %8 {strides = array<i32>} : memref<16x64xf32, #tpu.memory_space<vmem>>, vector<16x64xf32>,
    return
  }
  func.func @transform_0(%arg0: i32, %arg1: i32) -> (i32, i32) {
    %c0_i32 = arith.constant 0 : i32
    %c0_i32_0 = arith.constant 0 : i32
    return %arg0, %c0_i32 : i32, i32
  }
  func.func @transform_1(%arg0: i32, %arg1: i32) -> (i32, i32) {
    %c0_i32 = arith.constant 0 : i32
    %c0_i32_0 = arith.constant 0 : i32
    %c0_i32_1 = arith.constant 0 : i32
    return %c0_i32, %c0_i32_0 : i32, i32
  }
  func.func @transform_2(%arg0: i32, %arg1: i32) -> (i32, i32) {
    %c0_i32 = arith.constant 0 : i32
    %c0_i32_0 = arith.constant 0 : i32
    %c0_i32_1 = arith.constant 0 : i32
    return %c0_i32, %c0_i32_0 : i32, i32
  }
  func.func @transform_3(%arg0: i32, %arg1: i32) -> (i32, i32) {
    %c0_i32 = arith.constant 0 : i32
    %c0_i32_0 = arith.constant 0 : i32
    %c0_i32_1 = arith.constant 0 : i32
    return %c0_i32, %c0_i32_0 : i32, i32
  }
  func.func @transform_4(%arg0: i32, %arg1: i32) -> (i32, i32) {
    %c0_i32 = arith.constant 0 : i32
    %c0_i32_0 = arith.constant 0 : i32
    %c0_i32_1 = arith.constant 0 : i32
    return %c0_i32, %c0_i32_0 : i32, i32
  }
  func.func @transform_5(%arg0: i32, %arg1: i32) -> (i32, i32) {
    %c0_i32 = arith.constant 0 : i32
    %c0_i32_0 = arith.constant 0 : i32
    return %c0_i32, %arg1 : i32, i32
  }
  func.func @transform_6(%arg0: i32, %arg1: i32) -> (i32, i32) {
    %c0_i32 = arith.constant 0 : i32
    %c0_i32_0 = arith.constant 0 : i32
    return %c0_i32, %arg1 : i32, i32
  }
  func.func @transform_7(%arg0: i32, %arg1: i32) -> (i32, i32) {
    %c0_i32 = arith.constant 0 : i32
    return %arg0, %arg1 : i32, i32
  }
}

</mosaic_0001>

<bundles_post_ra>
// kernel: tpu_custom_call.1
= control target key start
LH: loop header
LB: loop body
LE: loop exit
PB: predicated region body
PF: predicated region fallthrough
CT: control target
= control target key end

     0   :  { %12 = vsyncpa [#allocation4], 0  ;;  %s641_s0 = inlined_call_operand.hbm [shape: f32[16,32], index: 0, kind: input, shape index: {}]   ;;  %s642_s1 = inlined_call_operand.hbm [shape: f32[32,32], index: 1, kind: input, shape index: {}]   ;;  %s643_s2 = inlined_call_operand.vmem [shape: f32[1,32], index: 2, kind: input, shape index: {}]   ;;  %s644_s3 = inlined_call_operand.vmem [shape: f32[1,32], index: 3, kind: input, shape index: {}]   ;;  %s645_s4 = inlined_call_operand.vmem [shape: f32[1,32], index: 4, kind: input, shape index: {}]   ;;  %s646_s5 = inlined_call_operand.hbm [shape: f32[32,64], index: 5, kind: input, shape index: {}]   ;;  %s647_s6 = inlined_call_operand.vmem [shape: f32[1,64], index: 6, kind: input, shape index: {}]   ;;  %s648_s7 = inlined_call_operand.hbm [shape: f32[16,64], index: 7, kind: output, shape index: {}]  }
   0x1   :  { %13 = vsyncpa [#allocation7], 0 }
   0x2   :  { %14 = vsyncpa [#allocation5], 0  ;;  %s506_s24 = smov [#allocation6]   ;;  %s507_s26 = smov [#allocation3]  }
   0x3   :  { %s32_s25 = sshll.u32 %s506_s24, 4  ;;  %s20_s27 = sshll.u32 %s507_s26, 4  ;;  %s33_s25 = int_to_ptr.vmem [resolvable:$true] %s32_s25  ;;  %s552_s27 = int_to_ptr.vmem [resolvable:$true] %s20_s27 }
   0x4   :  { %s412_s30 = scalar_lea.hbm %s642_s1, 512 }
   0x5   :  { %p413_p0 = scmp.ne.s32.totalorder %s642_s1, %s412_s30  ;;  %p416_p1 = scmp.lt.u32.totalorder %s412_s30, %s642_s1 }
   0x7   :  { %p418_p2 = pnand %p416_p1, %p413_p0 }
   0x9   :  { %421 = shalt.err (!%p418_p2)
}
   0xa   :  { %s422_s12 = scalar_lea.vmem %s33_s25, 512  ;;  %p427_p4 = scmp.lt.s32.totalorder %s33_s25, %s33_s25 }
   0xb   :  { %p423_p3 = scmp.ne.s32.totalorder %s33_s25, %s422_s12  ;;  %p428_p5 = scmp.lt.s32.totalorder %s422_s12, %s422_s12 }
   0xd   :  { %p429_p6 = por %p428_p5, %p427_p4 }
   0xf   :  { %p430_p7 = pnand %p429_p6, %p423_p3 }
  0x11   :  { %433 = shalt.err (!%p430_p7)
}
  0x12   :  { %s508_s13 = smov 128   ;;  %s509_s14 = smov 8  }
  0x13   :  { %38 = dma.hbm_to_vmem [thread:$0]  %s642_s1, 512, %s33_s25, [#allocation7], %s508_s13, %s508_s13, %s509_s14  }
  0x14   :  { %s434_s19 = scalar_lea.hbm %s641_s0, 256 }
  0x15   :  { %p435_p8 = scmp.ne.s32.totalorder %s641_s0, %s434_s19  ;;  %p438_p9 = scmp.lt.u32.totalorder %s434_s19, %s641_s0 }
  0x17   :  { %p440_p10 = pnand %p438_p9, %p435_p8 }
  0x19   :  { %443 = shalt.err (!%p440_p10)
}
  0x1a   :  { %s444_s24 = scalar_lea.vmem %s552_s27, 256  ;;  %p449_p12 = scmp.lt.s32.totalorder %s552_s27, %s552_s27 }
  0x1b   :  { %p445_p11 = scmp.ne.s32.totalorder %s552_s27, %s444_s24  ;;  %p450_p13 = scmp.lt.s32.totalorder %s444_s24, %s444_s24 }
  0x1d   :  { %p451_p0 = por %p450_p13, %p449_p12 }
  0x1f   :  { %p452_p1 = pnand %p451_p0, %p445_p11 }
  0x21   :  { %455 = shalt.err (!%p452_p1)
}
  0x22   :  { %26 = dma.hbm_to_vmem [thread:$0]  %s641_s0, 256, %s552_s27, [#allocation4], %s508_s13, %s508_s13, %s509_s14  }
  0x23   :  { %s510_s26 = smov [#allocation8]   ;;  %s456_s8 = scalar_lea.hbm %s646_s5, 512 }
  0x24   :  { %s50_s28 = sshll.u32 %s510_s26, 4  ;;  %p457_p2 = scmp.ne.s32.totalorder %s646_s5, %s456_s8  ;;  %s51_s28 = int_to_ptr.vmem [resolvable:$true] %s50_s28 }
  0x25   :  { %p460_p3 = scmp.lt.u32.totalorder %s456_s8, %s646_s5 }
  0x27   :  { %p462_p4 = pnand %p460_p3, %p457_p2 }
  0x29   :  { %465 = shalt.err (!%p462_p4)
}
  0x2a   :  { %s466_s15 = scalar_lea.vmem %s51_s28, 512  ;;  %p471_p6 = scmp.lt.s32.totalorder %s51_s28, %s51_s28 }
  0x2b   :  { %p467_p5 = scmp.ne.s32.totalorder %s51_s28, %s466_s15  ;;  %p472_p7 = scmp.lt.s32.totalorder %s466_s15, %s466_s15 }
  0x2d   :  { %p473_p8 = por %p472_p7, %p471_p6 }
  0x2f   :  { %p474_p9 = pnand %p473_p8, %p467_p5 }
  0x31   :  { %477 = shalt.err (!%p474_p9)
}
  0x32   :  { %56 = dma.hbm_to_vmem [thread:$0]  %s646_s5, 512, %s51_s28, [#allocation7], %s508_s13, %s508_s13, %s509_s14  }
  0x33   :  { %500 = dma.done.wait [#allocation4], 256  }
  0x34   :  { %501 = vsyncadd [#allocation4], 4294967040 }
  0x35   :  { %502 = dma.done.wait [#allocation7], 1024  }
  0x36   :  { %503 = vsyncadd [#allocation7], 4294966272  ;;  %vm85_vm0 = vcmask 261120   ;;  %v74_v0 = vld [vmem:[#allocation6] sm:$0xff]  ;;  %v75_v1 = vld [vmem:[#allocation6 + $0x8] sm:$0xff]  ;;  %vm319_vm1 = vcmask 523264  }
  0x37   :  { %v76_v2 = vld [vmem:[#allocation6 + $0x10] sm:$0xff]  ;;  %v382_v3 = vpack.c.bf16 %v75_v1, %v74_v0  ;;  %v77_v4 = vld [vmem:[#allocation6 + $0x18] sm:$0xff]  ;;  %v340_v8 = vld [vmem:[%s643_s2] ss:$0 sm:$0xff] }
  0x38   :  { %v72_v5 = vld [vmem:[#allocation3] sm:$0xff]  ;;  %v386_v6 = vpack.c.bf16 %v77_v4, %v76_v2  ;;  %v73_v7 = vld [vmem:[#allocation3 + $0x8] sm:$0xff]  ;;  %v226_v35 = vld [vmem:[#allocation8] sm:$0xff] }
  0x39   :  { %368 = vmatprep.mubr.msk.f32.mxu0 %vm85_vm0, %v72_v5  ;;  %383 = vmatprep.subr.bf16.mxu0 %v382_v3  ;;  %v227_v36 = vld [vmem:[#allocation8 + $0x8] sm:$0xff]  ;;  %v228_v38 = vld [vmem:[#allocation8 + $0x10] sm:$0xff]  ;;  %v229_v39 = vld [vmem:[#allocation8 + $0x18] sm:$0xff] }
  0x3a   :  { %385 = vmatpush3.bf16.msra.mxu0 %v382_v3  ;;  %v390_v37 = vpack.c.bf16 %v227_v36, %v226_v35  ;;  %v394_v40 = vpack.c.bf16 %v229_v39, %v228_v38  ;;  %v343_v48 = vld [vmem:[%s644_s3] ss:$0 sm:$0xff] }
  0x3b   :  { %387 = vmatprep.subr.bf16.mxu0 %v386_v6  ;;  %v344_v50 = vld [vmem:[%s645_s4] ss:$0 sm:$0xff]  ;;  %s511_s4 = smov [#allocation9]  }
  0x3c   :  { %391 = vmatprep.subr.bf16.mxu1 %v390_v37  ;;  %v345_v59 = vld [vmem:[%s647_s6] ss:$0 sm:$0xff]  ;;  %s327_s21 = sshll.u32 %s511_s4, 4  ;;  %s328_s21 = int_to_ptr.vmem [resolvable:$true] %s327_s21 }
  0x3d   :  { %393 = vmatpush3.bf16.msra.mxu1 %v390_v37  ;;  %s478_s22 = scalar_lea.vmem %s328_s21, 256  ;;  %p483_p11 = scmp.lt.s32.totalorder %s328_s21, %s328_s21 }
  0x3e   :  { %389 = vmatpush3.bf16.msra.mxu0 %v386_v6  ;;  %395 = vmatprep.subr.bf16.mxu1 %v394_v40  ;;  %p479_p10 = scmp.ne.s32.totalorder %s328_s21, %s478_s22  ;;  %p484_p12 = scmp.lt.s32.totalorder %s478_s22, %s478_s22 }
  0x40   :  { %p485_p13 = por %p484_p12, %p483_p11 }
  0x41   :  { %369 = vmatmul.mubr.msk.f32.vlgmr.msra.gmra.mrb[0].mxu0 %vm85_vm0, %v73_v7  ;;  %397 = vmatpush3.bf16.msra.mxu1 %v394_v40 }
  0x42   :  { %p486_p0 = pnand %p485_p13, %p479_p10 }
 0x114   :  { %v370_v9 = vpop.f32.mrb[0].mxu0 }
 0x115   :  { %v164_v10 = vadd.f32 %v370_v9, %v340_v8  ;;  %v158_v11 = vpop.f32.mrb[1].mxu0 }
 0x116   :  { %v159_v12 = vadd.f32 %v340_v8, %v158_v11 }
 0x117   :  { %v170_v13 = vmul.f32 0.70710677, %v164_v10  ;;  %v168_v20 = vmul.f32 0.5, %v164_v10 }
 0x118   :  { %v169_v14 = vmul.f32 0.70710677, %v159_v12  ;;  %v167_v17 = vmul.f32 0.5, %v159_v12 }
 0x119   :  { %404 = verf.f32 %v170_v13 }
 0x11a   :  { %406 = verf.f32 %v169_v14 }
 0x123   :  { %v405_v15 = vpop.eup %404 }
 0x124   :  { %v407_v16 = vpop.eup %406  ;;  %v174_v19 = vadd.f32 1.0, %v405_v15 }
 0x125   :  { %v173_v18 = vadd.f32 1.0, %v407_v16 }
 0x126   :  { %v176_v23 = vmul.f32 %v174_v19, %v168_v20 }
 0x127   :  { %v175_v21 = vmul.f32 %v173_v18, %v167_v17 }
 0x128   :  { %v180_v24 = vsel %vm85_vm0, %v176_v23, 0.0 }
 0x129   :  { %v177_v22 = vsel %vm85_vm0, %v175_v21, 0.0 }
 0x12a   :  { %178 = vadd.xlane.f32.xlu0 %v177_v22 }
 0x12e   :  { %181 = vadd.xlane.f32.xlu0 %v180_v24 }
 0x1b7   :  { %v179_v25 = vpop.xlane.xlu0 %178 }
 0x1b8   :  { %v184_v26 = vmul.f32 0.03125, %v179_v25 }
 0x1ba   :  { %v186_v27 = vsub.f32 %v175_v21, %v184_v26 }
 0x1bb   :  { %v182_v28 = vpop.xlane.xlu0 %181 }
 0x1bc   :  { %v185_v29 = vmul.f32 0.03125, %v182_v28  ;;  %v188_v30 = vmul.f32 %v186_v27, %v186_v27 }
 0x1be   :  { %v187_v31 = vsub.f32 %v176_v23, %v185_v29  ;;  %v190_v32 = vsel %vm85_vm0, %v188_v30, 0.0 }
 0x1bf   :  { %191 = vadd.xlane.f32.xlu1 %v190_v32 }
 0x1c0   :  { %v189_v33 = vmul.f32 %v187_v31, %v187_v31 }
 0x1c2   :  { %v193_v34 = vsel %vm85_vm0, %v189_v33, 0.0 }
 0x1c3   :  { %194 = vadd.xlane.f32.xlu1 %v193_v34 }
 0x24c   :  { %v192_v41 = vpop.xlane.xlu1 %191 }
 0x24d   :  { %v196_v42 = vmul.f32 0.03125, %v192_v41 }
 0x24f   :  { %v198_v43 = vadd.f32 1e-05, %v196_v42 }
 0x250   :  { %v195_v44 = vpop.xlane.xlu1 %194 }
 0x251   :  { %408 = vrsqrt.f32 %v198_v43  ;;  %v197_v45 = vmul.f32 0.03125, %v195_v44 }
 0x253   :  { %v199_v46 = vadd.f32 1e-05, %v197_v45 }
 0x255   :  { %410 = vrsqrt.f32 %v199_v46 }
 0x25b   :  { %v409_v47 = vpop.eup %408 }
 0x25c   :  { %v202_v49 = vmul.f32 %v409_v47, %v186_v27 }
 0x25e   :  { %v211_v51 = vmul.f32 %v343_v48, %v202_v49 }
 0x25f   :  { %v411_v52 = vpop.eup %410 }
 0x260   :  { %v220_v53 = vadd.f32 %v344_v50, %v211_v51  ;;  %v203_v54 = vmul.f32 %v411_v52, %v187_v31 }
 0x262   :  { %222 = vst.msk [vmem:[#allocation2] sm:$0xff] %vm85_vm0, %v220_v53  ;;  %v212_v55 = vmul.f32 %v343_v48, %v203_v54 }
 0x264   :  { %v221_v56 = vadd.f32 %v344_v50, %v212_v55 }
 0x266   :  { %223 = vst.msk [vmem:[#allocation2 + $0x8] sm:$0xff] %vm85_vm0, %v221_v56 }
 0x269   :  { %v224_v57 = vld [vmem:[#allocation2] sm:$0xff] }
 0x26a   :  { %379 = vmatprep.mubr.msk.f32.mxu1 %vm85_vm0, %v224_v57 }
 0x26d   :  { %v225_v58 = vld [vmem:[#allocation2 + $0x8] sm:$0xff] }
 0x26e   :  { %380 = vmatmul.mubr.msk.f32.vlgmr.msra.gmra.mrb[0].mxu1 %vm85_vm0, %v225_v58 }
 0x341   :  { %v381_v60 = vpop.f32.mrb[0].mxu1 }
 0x342   :  { %v316_v61 = vadd.f32 %v381_v60, %v345_v59  ;;  %v310_v62 = vpop.f32.mrb[1].mxu1 }
 0x343   :  { %v311_v63 = vadd.f32 %v345_v59, %v310_v62 }
 0x344   :  { %321 = vst.msk [vmem:[#allocation9 + $0x8] sm:$0xff] %vm319_vm1, %v316_v61 }
 0x345   :  { %320 = vst.msk [vmem:[#allocation9] sm:$0xff] %vm319_vm1, %v311_v63 }
 0x346   :  { %489 = shalt.err (!%p486_p0)
}
 0x347   :  { %s490_s6 = scalar_lea.hbm %s648_s7, 256 }
 0x348   :  { %p491_p1 = scmp.ne.s32.totalorder %s648_s7, %s490_s6  ;;  %p494_p2 = scmp.lt.u32.totalorder %s490_s6, %s648_s7 }
 0x34a   :  { %p496_p3 = pnand %p494_p2, %p491_p1 }
 0x34c   :  { %499 = shalt.err (!%p496_p3)
}
 0x34d   :  { %333 = dma.vmem_to_hbm [thread:$0]  %s328_s21, 256, %s648_s7, [#allocation5], %s508_s13, %s508_s13, %s509_s14  }
 0x34e   :  { %504 = dma.done.wait [#allocation5], 256  }
 0x34f   :  { %505 = vsyncadd [#allocation5], 4294967040 }
 0x350   :  { %337 = vsyncpa [#allocation4], 1 }
 0x351   :  { %338 = vsyncpa [#allocation7], 1 }
 0x352   :  { %339 = vsyncpa [#allocation5], 1 }

// kernel: tpu_custom_call.1
= control target key start
LH: loop header
LB: loop body
LE: loop exit
PB: predicated region body
PF: predicated region fallthrough
CT: control target
= control target key end

     0   :  { %12 = vsyncpa [#allocation4], 0  ;;  %s641_s0 = inlined_call_operand.hbm [shape: f32[16,32], index: 0, kind: input, shape index: {}]   ;;  %s642_s1 = inlined_call_operand.hbm [shape: f32[32,32], index: 1, kind: input, shape index: {}]   ;;  %s643_s2 = inlined_call_operand.vmem [shape: f32[1,32], index: 2, kind: input, shape index: {}]   ;;  %s644_s3 = inlined_call_operand.vmem [shape: f32[1,32], index: 3, kind: input, shape index: {}]   ;;  %s645_s4 = inlined_call_operand.vmem [shape: f32[1,32], index: 4, kind: input, shape index: {}]   ;;  %s646_s5 = inlined_call_operand.hbm [shape: f32[32,64], index: 5, kind: input, shape index: {}]   ;;  %s647_s6 = inlined_call_operand.vmem [shape: f32[1,64], index: 6, kind: input, shape index: {}]   ;;  %s648_s7 = inlined_call_operand.hbm [shape: f32[16,64], index: 7, kind: output, shape index: {}]  }
   0x1   :  { %13 = vsyncpa [#allocation7], 0 }
   0x2   :  { %14 = vsyncpa [#allocation5], 0  ;;  %s506_s24 = smov [#allocation6]   ;;  %s507_s26 = smov [#allocation3]  }
   0x3   :  { %s32_s25 = sshll.u32 %s506_s24, 4  ;;  %s20_s27 = sshll.u32 %s507_s26, 4  ;;  %s33_s25 = int_to_ptr.vmem [resolvable:$true] %s32_s25  ;;  %s552_s27 = int_to_ptr.vmem [resolvable:$true] %s20_s27 }
   0x4   :  { %s412_s30 = scalar_lea.hbm %s642_s1, 512 }
   0x5   :  { %p413_p0 = scmp.ne.s32.totalorder %s642_s1, %s412_s30  ;;  %p416_p1 = scmp.lt.u32.totalorder %s412_s30, %s642_s1 }
   0x7   :  { %p418_p2 = pnand %p416_p1, %p413_p0 }
   0x9   :  { %421 = shalt.err (!%p418_p2)
}
   0xa   :  { %s422_s12 = scalar_lea.vmem %s33_s25, 512  ;;  %p427_p4 = scmp.lt.s32.totalorder %s33_s25, %s33_s25 }
   0xb   :  { %p423_p3 = scmp.ne.s32.totalorder %s33_s25, %s422_s12  ;;  %p428_p5 = scmp.lt.s32.totalorder %s422_s12, %s422_s12 }
   0xd   :  { %p429_p6 = por %p428_p5, %p427_p4 }
   0xf   :  { %p430_p7 = pnand %p429_p6, %p423_p3 }
  0x11   :  { %433 = shalt.err (!%p430_p7)
}
  0x12   :  { %s508_s13 = smov 128   ;;  %s509_s14 = smov 8  }
  0x13   :  { %38 = dma.hbm_to_vmem [thread:$0]  %s642_s1, 512, %s33_s25, [#allocation7], %s508_s13, %s508_s13, %s509_s14  }
  0x14   :  { %s434_s19 = scalar_lea.hbm %s641_s0, 256 }
  0x15   :  { %p435_p8 = scmp.ne.s32.totalorder %s641_s0, %s434_s19  ;;  %p438_p9 = scmp.lt.u32.totalorder %s434_s19, %s641_s0 }
  0x17   :  { %p440_p10 = pnand %p438_p9, %p435_p8 }
  0x19   :  { %443 = shalt.err (!%p440_p10)
}
  0x1a   :  { %s444_s24 = scalar_lea.vmem %s552_s27, 256  ;;  %p449_p12 = scmp.lt.s32.totalorder %s552_s27, %s552_s27 }
  0x1b   :  { %p445_p11 = scmp.ne.s32.totalorder %s552_s27, %s444_s24  ;;  %p450_p13 = scmp.lt.s32.totalorder %s444_s24, %s444_s24 }
  0x1d   :  { %p451_p0 = por %p450_p13, %p449_p12 }
  0x1f   :  { %p452_p1 = pnand %p451_p0, %p445_p11 }
  0x21   :  { %455 = shalt.err (!%p452_p1)
}
  0x22   :  { %26 = dma.hbm_to_vmem [thread:$0]  %s641_s0, 256, %s552_s27, [#allocation4], %s508_s13, %s508_s13, %s509_s14  }
  0x23   :  { %s510_s26 = smov [#allocation8]   ;;  %s456_s8 = scalar_lea.hbm %s646_s5, 512 }
  0x24   :  { %s50_s28 = sshll.u32 %s510_s26, 4  ;;  %p457_p2 = scmp.ne.s32.totalorder %s646_s5, %s456_s8  ;;  %s51_s28 = int_to_ptr.vmem [resolvable:$true] %s50_s28 }
  0x25   :  { %p460_p3 = scmp.lt.u32.totalorder %s456_s8, %s646_s5 }
  0x27   :  { %p462_p4 = pnand %p460_p3, %p457_p2 }
  0x29   :  { %465 = shalt.err (!%p462_p4)
}
  0x2a   :  { %s466_s15 = scalar_lea.vmem %s51_s28, 512  ;;  %p471_p6 = scmp.lt.s32.totalorder %s51_s28, %s51_s28 }
  0x2b   :  { %p467_p5 = scmp.ne.s32.totalorder %s51_s28, %s466_s15  ;;  %p472_p7 = scmp.lt.s32.totalorder %s466_s15, %s466_s15 }
  0x2d   :  { %p473_p8 = por %p472_p7, %p471_p6 }
  0x2f   :  { %p474_p9 = pnand %p473_p8, %p467_p5 }
  0x31   :  { %477 = shalt.err (!%p474_p9)
}
  0x32   :  { %56 = dma.hbm_to_vmem [thread:$0]  %s646_s5, 512, %s51_s28, [#allocation7], %s508_s13, %s508_s13, %s509_s14  }
  0x33   :  { %500 = dma.done.wait [#allocation4], 256  }
  0x34   :  { %501 = vsyncadd [#allocation4], 4294967040 }
  0x35   :  { %502 = dma.done.wait [#allocation7], 1024  }
  0x36   :  { %503 = vsyncadd [#allocation7], 4294966272  ;;  %vm85_vm0 = vcmask 261120   ;;  %v74_v0 = vld [vmem:[#allocation6] sm:$0xff]  ;;  %v75_v1 = vld [vmem:[#allocation6 + $0x8] sm:$0xff]  ;;  %vm319_vm1 = vcmask 523264  }
  0x37   :  { %v76_v2 = vld [vmem:[#allocation6 + $0x10] sm:$0xff]  ;;  %v382_v3 = vpack.c.bf16 %v75_v1, %v74_v0  ;;  %v77_v4 = vld [vmem:[#allocation6 + $0x18] sm:$0xff]  ;;  %v340_v8 = vld [vmem:[%s643_s2] ss:$0 sm:$0xff] }
  0x38   :  { %v72_v5 = vld [vmem:[#allocation3] sm:$0xff]  ;;  %v386_v6 = vpack.c.bf16 %v77_v4, %v76_v2  ;;  %v73_v7 = vld [vmem:[#allocation3 + $0x8] sm:$0xff]  ;;  %v226_v35 = vld [vmem:[#allocation8] sm:$0xff] }
  0x39   :  { %368 = vmatprep.mubr.msk.f32.mxu0 %vm85_vm0, %v72_v5  ;;  %383 = vmatprep.subr.bf16.mxu0 %v382_v3  ;;  %v227_v36 = vld [vmem:[#allocation8 + $0x8] sm:$0xff]  ;;  %v228_v38 = vld [vmem:[#allocation8 + $0x10] sm:$0xff]  ;;  %v229_v39 = vld [vmem:[#allocation8 + $0x18] sm:$0xff] }
  0x3a   :  { %385 = vmatpush3.bf16.msra.mxu0 %v382_v3  ;;  %v390_v37 = vpack.c.bf16 %v227_v36, %v226_v35  ;;  %v394_v40 = vpack.c.bf16 %v229_v39, %v228_v38  ;;  %v343_v48 = vld [vmem:[%s644_s3] ss:$0 sm:$0xff] }
  0x3b   :  { %387 = vmatprep.subr.bf16.mxu0 %v386_v6  ;;  %v344_v50 = vld [vmem:[%s645_s4] ss:$0 sm:$0xff]  ;;  %s511_s4 = smov [#allocation9]  }
  0x3c   :  { %391 = vmatprep.subr.bf16.mxu1 %v390_v37  ;;  %v345_v59 = vld [vmem:[%s647_s6] ss:$0 sm:$0xff]  ;;  %s327_s21 = sshll.u32 %s511_s4, 4  ;;  %s328_s21 = int_to_ptr.vmem [resolvable:$true] %s327_s21 }
  0x3d   :  { %393 = vmatpush3.bf16.msra.mxu1 %v390_v37  ;;  %s478_s22 = scalar_lea.vmem %s328_s21, 256  ;;  %p483_p11 = scmp.lt.s32.totalorder %s328_s21, %s328_s21 }
  0x3e   :  { %389 = vmatpush3.bf16.msra.mxu0 %v386_v6  ;;  %395 = vmatprep.subr.bf16.mxu1 %v394_v40  ;;  %p479_p10 = scmp.ne.s32.totalorder %s328_s21, %s478_s22  ;;  %p484_p12 = scmp.lt.s32.totalorder %s478_s22, %s478_s22 }
  0x40   :  { %p485_p13 = por %p484_p12, %p483_p11 }
  0x41   :  { %369 = vmatmul.mubr.msk.f32.vlgmr.msra.gmra.mrb[0].mxu0 %vm85_vm0, %v73_v7  ;;  %397 = vmatpush3.bf16.msra.mxu1 %v394_v40 }
  0x42   :  { %p486_p0 = pnand %p485_p13, %p479_p10 }
 0x114   :  { %v370_v9 = vpop.f32.mrb[0].mxu0 }
 0x115   :  { %v164_v10 = vadd.f32 %v370_v9, %v340_v8  ;;  %v158_v11 = vpop.f32.mrb[1].mxu0 }
 0x116   :  { %v159_v12 = vadd.f32 %v340_v8, %v158_v11 }
 0x117   :  { %v170_v13 = vmul.f32 0.70710677, %v164_v10  ;;  %v168_v20 = vmul.f32 0.5, %v164_v10 }
 0x118   :  { %v169_v14 = vmul.f32 0.70710677, %v159_v12  ;;  %v167_v17 = vmul.f32 0.5, %v159_v12 }
 0x119   :  { %404 = verf.f32 %v170_v13 }
 0x11a   :  { %406 = verf.f32 %v169_v14 }
 0x123   :  { %v405_v15 = vpop.eup %404 }
 0x124   :  { %v407_v16 = vpop.eup %406  ;;  %v174_v19 = vadd.f32 1.0, %v405_v15 }
 0x125   :  { %v173_v18 = vadd.f32 1.0, %v407_v16 }
 0x126   :  { %v176_v23 = vmul.f32 %v174_v19, %v168_v20 }
 0x127   :  { %v175_v21 = vmul.f32 %v173_v18, %v167_v17 }
 0x128   :  { %v180_v24 = vsel %vm85_vm0, %v176_v23, 0.0 }
 0x129   :  { %v177_v22 = vsel %vm85_vm0, %v175_v21, 0.0 }
 0x12a   :  { %178 = vadd.xlane.f32.xlu0 %v177_v22 }
 0x12e   :  { %181 = vadd.xlane.f32.xlu0 %v180_v24 }
 0x1b7   :  { %v179_v25 = vpop.xlane.xlu0 %178 }
 0x1b8   :  { %v184_v26 = vmul.f32 0.03125, %v179_v25 }
 0x1ba   :  { %v186_v27 = vsub.f32 %v175_v21, %v184_v26 }
 0x1bb   :  { %v182_v28 = vpop.xlane.xlu0 %181 }
 0x1bc   :  { %v185_v29 = vmul.f32 0.03125, %v182_v28  ;;  %v188_v30 = vmul.f32 %v186_v27, %v186_v27 }
 0x1be   :  { %v187_v31 = vsub.f32 %v176_v23, %v185_v29  ;;  %v190_v32 = vsel %vm85_vm0, %v188_v30, 0.0 }
 0x1bf   :  { %191 = vadd.xlane.f32.xlu1 %v190_v32 }
 0x1c0   :  { %v189_v33 = vmul.f32 %v187_v31, %v187_v31 }
 0x1c2   :  { %v193_v34 = vsel %vm85_vm0, %v189_v33, 0.0 }
 0x1c3   :  { %194 = vadd.xlane.f32.xlu1 %v193_v34 }
 0x24c   :  { %v192_v41 = vpop.xlane.xlu1 %191 }
 0x24d   :  { %v196_v42 = vmul.f32 0.03125, %v192_v41 }
 0x24f   :  { %v198_v43 = vadd.f32 1e-05, %v196_v42 }
 0x250   :  { %v195_v44 = vpop.xlane.xlu1 %194 }
 0x251   :  { %408 = vrsqrt.f32 %v198_v43  ;;  %v197_v45 = vmul.f32 0.03125, %v195_v44 }
 0x253   :  { %v199_v46 = vadd.f32 1e-05, %v197_v45 }
 0x255   :  { %410 = vrsqrt.f32 %v199_v46 }
 0x25b   :  { %v409_v47 = vpop.eup %408 }
 0x25c   :  { %v202_v49 = vmul.f32 %v409_v47, %v186_v27 }
 0x25e   :  { %v211_v51 = vmul.f32 %v343_v48, %v202_v49 }
 0x25f   :  { %v411_v52 = vpop.eup %410 }
 0x260   :  { %v220_v53 = vadd.f32 %v344_v50, %v211_v51  ;;  %v203_v54 = vmul.f32 %v411_v52, %v187_v31 }
 0x262   :  { %222 = vst.msk [vmem:[#allocation2] sm:$0xff] %vm85_vm0, %v220_v53  ;;  %v212_v55 = vmul.f32 %v343_v48, %v203_v54 }
 0x264   :  { %v221_v56 = vadd.f32 %v344_v50, %v212_v55 }
 0x266   :  { %223 = vst.msk [vmem:[#allocation2 + $0x8] sm:$0xff] %vm85_vm0, %v221_v56 }
 0x269   :  { %v224_v57 = vld [vmem:[#allocation2] sm:$0xff] }
 0x26a   :  { %379 = vmatprep.mubr.msk.f32.mxu1 %vm85_vm0, %v224_v57 }
 0x26d   :  { %v225_v58 = vld [vmem:[#allocation2 + $0x8] sm:$0xff] }
 0x26e   :  { %380 = vmatmul.mubr.msk.f32.vlgmr.msra.gmra.mrb[0].mxu1 %vm85_vm0, %v225_v58 }
 0x341   :  { %v381_v60 = vpop.f32.mrb[0].mxu1 }
 0x342   :  { %v316_v61 = vadd.f32 %v381_v60, %v345_v59  ;;  %v310_v62 = vpop.f32.mrb[1].mxu1 }
 0x343   :  { %v311_v63 = vadd.f32 %v345_v59, %v310_v62 }
 0x344   :  { %321 = vst.msk [vmem:[#allocation9 + $0x8] sm:$0xff] %vm319_vm1, %v316_v61 }
 0x345   :  { %320 = vst.msk [vmem:[#allocation9] sm:$0xff] %vm319_vm1, %v311_v63 }
 0x346   :  { %489 = shalt.err (!%p486_p0)
}
 0x347   :  { %s490_s6 = scalar_lea.hbm %s648_s7, 256 }
 0x348   :  { %p491_p1 = scmp.ne.s32.totalorder %s648_s7, %s490_s6  ;;  %p494_p2 = scmp.lt.u32.totalorder %s490_s6, %s648_s7 }
 0x34a   :  { %p496_p3 = pnand %p494_p2, %p491_p1 }
 0x34c   :  { %499 = shalt.err (!%p496_p3)
}
 0x34d   :  { %333 = dma.vmem_to_hbm [thread:$0]  %s328_s21, 256, %s648_s7, [#allocation5], %s508_s13, %s508_s13, %s509_s14  }
 0x34e   :  { %504 = dma.done.wait [#allocation5], 256  }
 0x34f   :  { %505 = vsyncadd [#allocation5], 4294967040 }
 0x350   :  { %337 = vsyncpa [#allocation4], 1 }
 0x351   :  { %338 = vsyncpa [#allocation7], 1 }
 0x352   :  { %339 = vsyncpa [#allocation5], 1 }

</bundles_post_ra>
